<compile_context>
chip_gen: v5e
topology: v5e:2x2
jax: 0.10.0
libtpu: 0.0.40
codegen_flags: <defaults>
</compile_context>

<pallas_src>
import math

import jax
import jax.numpy as jnp
from jax import lax
from jax.experimental import pallas as pl
from jax.experimental.pallas import tpu as pltpu

EPSILON = 1e-7                       # ml-agents torch_utils EPSILON
LOG_SQRT_2PI = 0.5 * math.log(2.0 * math.pi)
TWO_PI_E = 2.0 * math.pi * math.e


def _round_up(x: int, m: int) -> int:
    return ((x + m - 1) // m) * m


def action_model_kernel(x_ref, wt_ref, bt_ref, log_sigma_t_ref, eps_t_ref,
                        act_t_ref, logp_t_ref):
    x = x_ref[...]                                   # (TB, H) f32, natural layout
    wt = wt_ref[...]                                 # (A, H)  f32
    bt = bt_ref[...]                                 # (A, 1)  f32
    std = jnp.exp(log_sigma_t_ref[...])              # (A, 1)  f32
    eps_t = eps_t_ref[...]                           # (A, TB) f32, batch on lanes

    # mu^T = W^T @ x^T : contract hidden dim of both operands (rhs-transposed MXU mode)
    mu_t = lax.dot_general(
        wt, x, (((1,), (1,)), ((), ())),
        preferred_element_type=jnp.float32) + bt     # (A, TB)

    # action - mu == std * eps (exact identity); reuse for sample and log_prob.
    diff = std * eps_t                               # (A, TB)
    action_t = mu_t + diff                           # (A, TB)

    var = std * std                                  # (A, 1)
    inv_denom = pl.reciprocal(2.0 * var + EPSILON, approx=True)   # (A, 1), EUP
    logp_t = (-(diff * diff) * inv_denom
              - jnp.log(std + EPSILON)
              - LOG_SQRT_2PI)                        # (A, TB)

    # Lane-dense stores: last dim is TB (multiple of 128).
    act_t_ref[...] = action_t
    logp_t_ref[...] = logp_t


def action_model_forward(x, w_mu, b_mu, log_sigma, eps, *, tb_max: int = 512):
    """Returns (action, log_prob, entropy_sum) matching ActionModel.forward.

    x:         (B, H) encoding from the network body
    w_mu:      (H, A) Linear weight (mu = x @ w_mu + b_mu)
    b_mu:      (1, A) Linear bias
    log_sigma: (1, A) log-std parameter
    eps:       (B, A) standard-normal noise for dist.sample()
    """
    B, H = x.shape
    A = w_mu.shape[1]

    # Batch tile: lane-dense (multiple of 128), capped at tb_max.
    TB = min(tb_max, _round_up(B, 128))
    B_pad = _round_up(B, TB)
    grid = (B_pad // TB,)

    # Pad the batch axis if needed (padded rows are sliced off afterwards).
    x_p = x if B_pad == B else jnp.pad(x, ((0, B_pad - B), (0, 0)))
    eps_t = eps.T                                                # (A, B)
    eps_t_p = eps_t if B_pad == B else jnp.pad(eps_t, ((0, 0), (0, B_pad - B)))

    # Tiny parameter transposes (layout plumbing only).
    w_t = w_mu.T                                                 # (A, H)
    b_t = b_mu.T                                                 # (A, 1)
    log_sigma_t = log_sigma.T                                    # (A, 1)

    out_shapes = (
        jax.ShapeDtypeStruct((A, B_pad), jnp.float32),           # action^T
        jax.ShapeDtypeStruct((A, B_pad), jnp.float32),           # log_prob^T
    )

    action_t, log_prob_t = pl.pallas_call(
        action_model_kernel,
        out_shape=out_shapes,
        grid=grid,
        in_specs=[
            pl.BlockSpec((TB, H), lambda i: (i, 0)),             # x (batch-tiled)
            pl.BlockSpec((A, H), lambda i: (0, 0)),              # W^T (resident)
            pl.BlockSpec((A, 1), lambda i: (0, 0)),              # b^T (resident)
            pl.BlockSpec((A, 1), lambda i: (0, 0)),              # log_sigma^T (resident)
            pl.BlockSpec((A, TB), lambda i: (0, i)),             # eps^T (batch-tiled)
        ],
        out_specs=(
            pl.BlockSpec((A, TB), lambda i: (0, i)),
            pl.BlockSpec((A, TB), lambda i: (0, i)),
        ),
        compiler_params=pltpu.CompilerParams(
            dimension_semantics=("parallel",)),                  # megacore-shardable
    )(x_p, w_t, b_t, log_sigma_t, eps_t_p)

    action = action_t[:, :B].T                                   # (B, A)
    log_prob = log_prob_t[:, :B].T                               # (B, A)

    # Entropy depends only on log_sigma -> computed once, broadcast to the batch.
    std = jnp.exp(log_sigma)                                     # (1, A)
    entropy_scalar = jnp.mean(0.5 * jnp.log(TWO_PI_E * std * std + EPSILON))
    entropy_sum = jnp.full((B,), entropy_scalar, dtype=jnp.float32)

    return action, log_prob, entropy_sum


def _reference_forward(x, w_mu, b_mu, log_sigma, eps):
    """Pure-JAX reference mirroring the torch module (for validation)."""
    mu = x @ w_mu + b_mu
    std = jnp.broadcast_to(jnp.exp(log_sigma), mu.shape)
    var = std * std
    action = mu + std * eps
    log_prob = (-((action - mu) ** 2) / (2.0 * var + EPSILON)
                - jnp.log(std + EPSILON) - LOG_SQRT_2PI)
    entropy = jnp.mean(0.5 * jnp.log(TWO_PI_E * var + EPSILON), axis=1)   # (B,)
    return action, log_prob, entropy


if __name__ == "__main__":
    # Shapes consistent with the module: hidden_size=32, action_size=4.
    # Batch is sized to exercise the batch-tiled grid (2 tiles of 512 rows).
    B, H, A = 1024, 32, 4

    key = jax.random.PRNGKey(0)
    k_x, k_w, k_eps = jax.random.split(key, 3)

    # Network-body encoding (the module's `inputs`)
    x = jax.random.normal(k_x, (B, H), dtype=jnp.float32)

    # GaussianDistribution parameters (deterministic synthetic init):
    #   mu Linear: Kaiming-style scaled normal, zero bias; log_sigma: zeros.
    w_mu = jax.random.normal(k_w, (H, A), dtype=jnp.float32) * (0.2 / math.sqrt(H))
    b_mu = jnp.zeros((1, A), dtype=jnp.float32)
    log_sigma = jnp.zeros((1, A), dtype=jnp.float32)

    # Gaussian noise for dist.sample() (generated outside, consumed in-kernel).
    eps = jax.random.normal(k_eps, (B, A), dtype=jnp.float32)

    action, log_prob, entropy_sum = action_model_forward(x, w_mu, b_mu, log_sigma, eps)
    jax.block_until_ready((action, log_prob, entropy_sum))

    assert action.shape == (B, A)
    assert log_prob.shape == (B, A)
    assert entropy_sum.shape == (B,)

    # Light numerical check vs. pure-JAX reference (loose tol for approx reciprocal).
    ref_action, ref_log_prob, ref_entropy = _reference_forward(x, w_mu, b_mu, log_sigma, eps)
    assert bool(jnp.allclose(action, ref_action, atol=1e-5, rtol=1e-5))
    assert bool(jnp.allclose(log_prob, ref_log_prob, atol=2e-2, rtol=2e-2))
    assert bool(jnp.allclose(entropy_sum, ref_entropy, atol=1e-5, rtol=1e-5))

    print("KERNEL_OK")
</pallas_src>

<mosaic_0001>
module attributes {stable_mosaic.version = 11 : i64} {
  func.func @action_model_kernel(%arg0: i32, %arg1: memref<512x32xf32, #tpu.memory_space<vmem>>, %arg2: memref<4x32xf32, #tpu.memory_space<vmem>>, %arg3: memref<4x1xf32, #tpu.memory_space<vmem>>, %arg4: memref<4x1xf32, #tpu.memory_space<vmem>>, %arg5: memref<4x512xf32, #tpu.memory_space<vmem>>, %arg6: memref<4x512xf32, #tpu.memory_space<vmem>>, %arg7: memref<4x512xf32, #tpu.memory_space<vmem>>) attributes {dimension_semantics = [#tpu.dimension_semantics<parallel>], iteration_bounds = array<i64: 2>, scalar_prefetch = 0 : i64, scratch_operands = 0 : i64, tpu.core_type = #tpu.core_type<tc>, window_params = [{transform_indices = @transform_0, window_bounds = array<i64: 512, 32>}, {pipeline_mode = #tpu.pipeline_mode<synchronous>, transform_indices = @transform_1, window_bounds = array<i64: 4, 32>}, {pipeline_mode = #tpu.pipeline_mode<synchronous>, transform_indices = @transform_2, window_bounds = array<i64: 4, 1>}, {pipeline_mode = #tpu.pipeline_mode<synchronous>, transform_indices = @transform_3, window_bounds = array<i64: 4, 1>}, {transform_indices = @transform_4, window_bounds = array<i64: 4, 512>}, {transform_indices = @transform_5, window_bounds = array<i64: 4, 512>}, {transform_indices = @transform_6, window_bounds = array<i64: 4, 512>}]} {
    %c0 = arith.constant 0 : index
    %c0_0 = arith.constant 0 : index
    %0 = vector.load %arg1[%c0, %c0_0] : memref<512x32xf32, #tpu.memory_space<vmem>>, vector<512x32xf32>
    %c0_1 = arith.constant 0 : index
    %c0_2 = arith.constant 0 : index
    %1 = vector.load %arg2[%c0_1, %c0_2] : memref<4x32xf32, #tpu.memory_space<vmem>>, vector<4x32xf32>
    %c0_3 = arith.constant 0 : index
    %c0_4 = arith.constant 0 : index
    %2 = vector.load %arg3[%c0_3, %c0_4] : memref<4x1xf32, #tpu.memory_space<vmem>>, vector<4x1xf32>
    %c0_5 = arith.constant 0 : index
    %c0_6 = arith.constant 0 : index
    %3 = vector.load %arg4[%c0_5, %c0_6] : memref<4x1xf32, #tpu.memory_space<vmem>>, vector<4x1xf32>
    %4 = math.exp %3 : vector<4x1xf32>
    %c0_7 = arith.constant 0 : index
    %c0_8 = arith.constant 0 : index
    %5 = vector.load %arg5[%c0_7, %c0_8] : memref<4x512xf32, #tpu.memory_space<vmem>>, vector<4x512xf32>
    %cst = arith.constant dense<0.000000e+00> : vector<4x512xf32>
    %6 = tpu.matmul %1, %0, %cst {dimension_numbers = #tpu.dot_dimension_numbers<[1], [1], [0], [0], [0, 0, 1, 0], [], []>} : vector<4x32xf32>, vector<512x32xf32>, vector<4x512xf32> -> vector<4x512xf32>
    %7 = vector.broadcast %2 : vector<4x1xf32> to vector<4x512xf32>
    %8 = arith.addf %6, %7 : vector<4x512xf32>
    %9 = vector.broadcast %4 : vector<4x1xf32> to vector<4x512xf32>
    %10 = arith.mulf %9, %5 : vector<4x512xf32>
    %11 = arith.addf %8, %10 : vector<4x512xf32>
    %12 = arith.mulf %4, %4 : vector<4x1xf32>
    %cst_9 = arith.constant 2.000000e+00 : f32
    %13 = vector.broadcast %cst_9 : f32 to vector<4x1xf32>
    %14 = arith.mulf %13, %12 : vector<4x1xf32>
    %cst_10 = arith.constant 1.000000e-07 : f32
    %15 = vector.broadcast %cst_10 : f32 to vector<4x1xf32>
    %16 = arith.addf %14, %15 : vector<4x1xf32>
    %17 = tpu.reciprocal %16 {approx = true} : vector<4x1xf32> -> vector<4x1xf32>
    %18 = arith.mulf %10, %10 : vector<4x512xf32>
    %cst_11 = arith.constant 0.000000e+00 : f32
    %19 = vector.broadcast %cst_11 : f32 to vector<4x512xf32>
    %20 = arith.subf %19, %18 : vector<4x512xf32>
    %21 = vector.broadcast %17 : vector<4x1xf32> to vector<4x512xf32>
    %22 = arith.mulf %20, %21 : vector<4x512xf32>
    %cst_12 = arith.constant 1.000000e-07 : f32
    %23 = vector.broadcast %cst_12 : f32 to vector<4x1xf32>
    %24 = arith.addf %4, %23 : vector<4x1xf32>
    %25 = math.log %24 : vector<4x1xf32>
    %26 = vector.broadcast %25 : vector<4x1xf32> to vector<4x512xf32>
    %27 = arith.subf %22, %26 : vector<4x512xf32>
    %cst_13 = arith.constant 0.918938517 : f32
    %28 = vector.broadcast %cst_13 : f32 to vector<4x512xf32>
    %29 = arith.subf %27, %28 : vector<4x512xf32>
    %c0_14 = arith.constant 0 : index
    %c0_15 = arith.constant 0 : index
    %30 = vector.load %arg6[%c0_14, %c0_15] : memref<4x512xf32, #tpu.memory_space<vmem>>, vector<4x512xf32>
    tpu.vector_store %arg6[%c0_14, %c0_15], %11 {strides = array<i32>} : memref<4x512xf32, #tpu.memory_space<vmem>>, vector<4x512xf32>,
    %c0_16 = arith.constant 0 : index
    %c0_17 = arith.constant 0 : index
    %31 = vector.load %arg7[%c0_16, %c0_17] : memref<4x512xf32, #tpu.memory_space<vmem>>, vector<4x512xf32>
    tpu.vector_store %arg7[%c0_16, %c0_17], %29 {strides = array<i32>} : memref<4x512xf32, #tpu.memory_space<vmem>>, vector<4x512xf32>,
    return
  }
  func.func @transform_0(%arg0: i32) -> (i32, i32) {
    %c0_i32 = arith.constant 0 : i32
    %c0_i32_0 = arith.constant 0 : i32
    return %arg0, %c0_i32 : i32, i32
  }
  func.func @transform_1(%arg0: i32) -> (i32, i32) {
    %c0_i32 = arith.constant 0 : i32
    %c0_i32_0 = arith.constant 0 : i32
    %c0_i32_1 = arith.constant 0 : i32
    return %c0_i32, %c0_i32_0 : i32, i32
  }
  func.func @transform_2(%arg0: i32) -> (i32, i32) {
    %c0_i32 = arith.constant 0 : i32
    %c0_i32_0 = arith.constant 0 : i32
    %c0_i32_1 = arith.constant 0 : i32
    return %c0_i32, %c0_i32_0 : i32, i32
  }
  func.func @transform_3(%arg0: i32) -> (i32, i32) {
    %c0_i32 = arith.constant 0 : i32
    %c0_i32_0 = arith.constant 0 : i32
    %c0_i32_1 = arith.constant 0 : i32
    return %c0_i32, %c0_i32_0 : i32, i32
  }
  func.func @transform_4(%arg0: i32) -> (i32, i32) {
    %c0_i32 = arith.constant 0 : i32
    %c0_i32_0 = arith.constant 0 : i32
    return %c0_i32, %arg0 : i32, i32
  }
  func.func @transform_5(%arg0: i32) -> (i32, i32) {
    %c0_i32 = arith.constant 0 : i32
    %c0_i32_0 = arith.constant 0 : i32
    return %c0_i32, %arg0 : i32, i32
  }
  func.func @transform_6(%arg0: i32) -> (i32, i32) {
    %c0_i32 = arith.constant 0 : i32
    %c0_i32_0 = arith.constant 0 : i32
    return %c0_i32, %arg0 : i32, i32
  }
}

</mosaic_0001>

<bundles_post_ra>
// kernel: tpu_custom_call.1
= control target key start
LH: loop header
LB: loop body
LE: loop exit
PB: predicated region body
PF: predicated region fallthrough
CT: control target
= control target key end

     0   :  { %12 = vsyncpa [#allocation3], 0  ;;  %s1422_s0 = inlined_call_operand.vmem [shape: f32[1024,32], index: 0, kind: input, shape index: {}]   ;;  %s1423_s1 = inlined_call_operand.vmem [shape: f32[4,32], index: 1, kind: input, shape index: {}]   ;;  %s1424_s2 = inlined_call_operand.vmem [shape: f32[4,1], index: 2, kind: input, shape index: {}]   ;;  %s1425_s3 = inlined_call_operand.vmem [shape: f32[4,1], index: 3, kind: input, shape index: {}]   ;;  %s1426_s4 = inlined_call_operand.vmem [shape: f32[4,1024], index: 4, kind: input, shape index: {}]   ;;  %s1427_s5 = inlined_call_operand.hbm [shape: f32[4,1024], index: 5, kind: output, shape index: {0}]   ;;  %s1428_s6 = inlined_call_operand.hbm [shape: f32[4,1024], index: 6, kind: output, shape index: {1}]  }
   0x1   :  { %14 = vsyncpa [#allocation3 + $0x1], 0 }
   0x2   :  { %15 = vsyncpa [#allocation5], 0 }
   0x3   :  { %17 = vsyncpa [#allocation5 + $0x1], 0  ;;  %s1145_s21 = smov 0   ;;  %s1147_s22 = smov 0  }
   0x4   :  { %s1149_s23 = smov 0   ;;  %s1151_s24 = smov 0  }
   0x5 LB: > { %s1166_s25 = sadd.s32 4294967295, %s1107_s24   ;;  %s868_s26 = sadd.s32 4294967294, %s1107_s24   ;;  %s1107_s24 = sphi %s1151_s24, %s1434_s24   ;;  %s1103_s23 = sphi %s1149_s23, %s1433_s23   ;;  %s1099_s22 = sphi %s1147_s22, %s1432_s22   ;;  %s1095_s21 = sphi %s1145_s21, %s1431_s21  }
   0x6   : > { %s1170_s27 = sadd.s32 1, %s1107_s24   ;;  %s145_s28 = sadd.s32 1, %s1103_s23 }
   0x7   : > { %s142_s29 = ssub.s32 %s1107_s24, %s1170_s27  ;;  %p155_p0 = scmp.ne.s32.totalorder %s1103_s23, %s1099_s22 }
   0x8   : > { %p143_p1 = scmp.eq.s32.totalorder %s142_s29, 0  ;;  %p156_p2 = scmp.eq.s32.totalorder %s1166_s25, 1 }
   0x9   : > { %p161_p3 = scmp.ne.s32.totalorder %s1099_s22, %s1095_s21  ;;  %p162_p4 = scmp.eq.s32.totalorder %s868_s26, 1 }
   0xa   : > { %s1181_s30 = scalar_select %p143_p1, %s1103_s23, %s145_s28  }
   0xb   : > { %p1183_p5 = por %p156_p2, %p155_p0  ;;  %p1187_p6 = por %p162_p4, %p161_p3 }
   0xc   : > { %p871_p7 = scmp.ge.s32.totalorder %s1107_s24, 1  ;;  %p233_p8 = scmp.lt.s32.totalorder %s1107_s24, 3 }
   0xe   : > { %p234_p9 = pnand %p871_p7, %p233_p8 }
   0xf   : > { %s874_s9 = sshll.u32 (!%p234_p9), %s1166_s25, 6  ;;  %s876_s20 = sshll.u32 (!%p234_p9), %s1166_s25, 2 }
  0x10   : > { %237 = sbr.rel (%p234_p9) target bundleno = 233 (0xe9), region = 40  ;;  %p274_p10 = scmp.lt.s32.totalorder (!%p234_p9), %s874_s9, 127 }
  0x11   : > { %p280_p11 = scmp.lt.s32.totalorder (!%p234_p9), %s876_s20, 7  ;;  %s958_s11 = sshll.u32 (!%p234_p9), %s1166_s25, 4 }
  0x12   : > { %s759_s15 = scalar_lea.hbm (!%p234_p9), %s1428_s6, %s958_s11 }
  0x13   : > { %s763_s18 = sshll.u32 (!%p234_p9), %s759_s15, 4  ;;  %s764_s18 = int_to_ptr.hbm [resolvable:$true] %s763_s18 }
  0x15   : > { %s1436_s9 = smov (!%p274_p10, %s874_s9), 127  ;;  %vm363_vm0 = vcmask 261120   ;;  %v353_v20 = vld [vmem:[%s1425_s3] sm:$0xf]  ;;  %v1109_v36 = vmov 0   ;;  %s1438_s20 = smov (!%p280_p11, %s876_s20), 7 }
  0x16   : > { %s875_s10 = sshll.u32 %s1436_s9, 3  ;;  %v354_v21 = vmul.f32 1.442695, %v353_v20  ;;  %1005 = vset.pattern.permute.xlu0 %v1109_v36  ;;  %1006 = vset.pattern.permute.xlu1 %v1109_v36  ;;  %v352_v41 = vld [vmem:[%s1424_s2] sm:$0xf]  ;;  %s877_s26 = sshll.u32 %s1438_s20, 2 }
  0x17   : > { %s1197_s13 = scalar_lea.vmem %s1422_s0, %s875_s10  ;;  %360 = vperm.xlu1 %1006, %v352_v41   ;;  %s283_s9 = scalar_lea.vmem %s1426_s4, %s877_s26  ;;  %vm708_vm1 = vcmask 1043456  }
  0x18   : > { %v302_v0 = vld [vmem:[%s1197_s13 + $0x78] sm:$0xff]  ;;  %v301_v4 = vld [vmem:[%s1197_s13 + $0x70] sm:$0xff]  ;;  %v300_v8 = vld [vmem:[%s1197_s13 + $0x68] sm:$0xff]  ;;  %1007 = vpow2.f32 %v354_v21  ;;  %s1355_s10 = sand.u32 1, %s1099_s22   ;;  %s1027_s20 = sshra.s32 %s764_s18, 4  ;;  %s1028_s20 = int_to_ptr.hbm [resolvable:$true] %s1027_s20 }
  0x19   : > { %v318_v1 = vld [vmem:[%s1197_s13 + $0xf8] sm:$0xff]  ;;  %878 = vmatpush.xpose.msk.msra.mxu0 %vm363_vm0, %v302_v0  ;;  %v317_v5 = vld [vmem:[%s1197_s13 + $0xf0] sm:$0xff]  ;;  %v316_v9 = vld [vmem:[%s1197_s13 + $0xe8] sm:$0xff]  ;;  %s872_s12 = sshll.u32 %s1355_s10, 4  ;;  %s733_s19 = scalar_lea.sflag [#allocation5], %s1355_s10 }
  0x1a   : > { %v334_v2 = vld [vmem:[%s1197_s13 + $0x178] sm:$0xff]  ;;  %895 = vmatpush.xpose.msk.msra.mxu1 %vm363_vm0, %v318_v1  ;;  %v333_v6 = vld [vmem:[%s1197_s13 + $0x170] sm:$0xff]  ;;  %v332_v10 = vld [vmem:[%s1197_s13 + $0x168] sm:$0xff]  ;;  %s272_s16 = scalar_lea.vmem [#allocation4], %s872_s12  ;;  %s1029_s26 = scalar_lea.hbm %s1028_s20, 16 }
  0x1b   : > { %v350_v3 = vld [vmem:[%s1197_s13 + $0x1f8] sm:$0xff]  ;;  %912 = vmatpush.xpose.msk.msra.mxu2 %vm363_vm0, %v334_v2  ;;  %v349_v7 = vld [vmem:[%s1197_s13 + $0x1f0] sm:$0xff]  ;;  %v348_v11 = vld [vmem:[%s1197_s13 + $0x1e8] sm:$0xff]  ;;  %s761_s17 = sshll.u32 %s272_s16, 4  ;;  %p1030_p12 = scmp.ne.s32.totalorder %s1028_s20, %s1029_s26  ;;  %s762_s17 = int_to_ptr.vmem [resolvable:$true] %s761_s17 }
  0x1c   : > { %929 = vmatpush.xpose.msk.msra.mxu3 %vm363_vm0, %v350_v3  ;;  %v299_v12 = vld [vmem:[%s1197_s13 + $0x60] sm:$0xff]  ;;  %v298_v16 = vld [vmem:[%s1197_s13 + $0x58] sm:$0xff]  ;;  %v297_v22 = vld [vmem:[%s1197_s13 + $0x50] sm:$0xff]  ;;  %p1034_p1 = scmp.lt.s32.totalorder %s1028_s20, %s1428_s6 }
  0x1d   : > { %879 = vmatpush.xpose.msk.msra.mxu0 %vm363_vm0, %v301_v4  ;;  %v315_v13 = vld [vmem:[%s1197_s13 + $0xe0] sm:$0xff]  ;;  %v314_v17 = vld [vmem:[%s1197_s13 + $0xd8] sm:$0xff]  ;;  %v313_v23 = vld [vmem:[%s1197_s13 + $0xd0] sm:$0xff]  ;;  %p1031_p13 = pnand %p1030_p12, %p1183_p5 }
  0x1e   : > { %896 = vmatpush.xpose.msk.msra.mxu1 %vm363_vm0, %v317_v5  ;;  %v331_v14 = vld [vmem:[%s1197_s13 + $0x160] sm:$0xff]  ;;  %v330_v18 = vld [vmem:[%s1197_s13 + $0x158] sm:$0xff]  ;;  %v329_v24 = vld [vmem:[%s1197_s13 + $0x150] sm:$0xff]  ;;  %v1008_v30 = vpop.eup %1007 }
  0x1f   : > { %913 = vmatpush.xpose.msk.msra.mxu2 %vm363_vm0, %v333_v6  ;;  %v347_v15 = vld [vmem:[%s1197_s13 + $0x1e0] sm:$0xff]  ;;  %v346_v19 = vld [vmem:[%s1197_s13 + $0x1d8] sm:$0xff]  ;;  %v345_v25 = vld [vmem:[%s1197_s13 + $0x1d0] sm:$0xff]  ;;  %v665_v33 = vmul.f32 %v1008_v30, %v1008_v30  ;;  %641 = vperm.xlu0 %1005, %v1008_v30   ;;  %v686_v38 = vadd.f32 1e-07, %v1008_v30  ;;  %p1032_p0 = pneg %p1031_p13 }
  0x20   : > { %930 = vmatpush.xpose.msk.msra.mxu3 %vm363_vm0, %v349_v7  ;;  %v296_v26 = vld [vmem:[%s1197_s13 + $0x48] sm:$0xff]  ;;  %v295_v31 = vld [vmem:[%s1197_s13 + $0x40] sm:$0xff]  ;;  %v294_v39 = vld [vmem:[%s1197_s13 + $0x38] sm:$0xff] }
  0x21   : > { %880 = vmatpush.xpose.msk.msra.mxu0 %vm363_vm0, %v300_v8  ;;  %v312_v27 = vld [vmem:[%s1197_s13 + $0xc8] sm:$0xff]  ;;  %v311_v32 = vld [vmem:[%s1197_s13 + $0xc0] sm:$0xff]  ;;  %v666_v37 = vmul.f32 2.0, %v665_v33  ;;  %v310_v40 = vld [vmem:[%s1197_s13 + $0xb8] sm:$0xff]  ;;  %1009 = vlog2.f32 %v686_v38 }
  0x22   : > { %897 = vmatpush.xpose.msk.msra.mxu1 %vm363_vm0, %v316_v9  ;;  %v328_v28 = vld [vmem:[%s1197_s13 + $0x148] sm:$0xff]  ;;  %v327_v34 = vld [vmem:[%s1197_s13 + $0x140] sm:$0xff]  ;;  %v326_v43 = vld [vmem:[%s1197_s13 + $0x138] sm:$0xff] }
  0x23   : > { %914 = vmatpush.xpose.msk.msra.mxu2 %vm363_vm0, %v332_v10  ;;  %v344_v29 = vld [vmem:[%s1197_s13 + $0x1c8] sm:$0xff]  ;;  %v343_v35 = vld [vmem:[%s1197_s13 + $0x1c0] sm:$0xff]  ;;  %v667_v42 = vadd.f32 1e-07, %v666_v37  ;;  %v342_v44 = vld [vmem:[%s1197_s13 + $0x1b8] sm:$0xff] }
  0x24   : > { %931 = vmatpush.xpose.msk.msra.mxu3 %vm363_vm0, %v348_v11  ;;  %v293_v45 = vld [vmem:[%s1197_s13 + $0x30] sm:$0xff]  ;;  %v292_v51 = vld [vmem:[%s1197_s13 + $0x28] sm:$0xff]  ;;  %v291_v56 = vld [vmem:[%s1197_s13 + $0x20] sm:$0xff] }
  0x25   : > { %881 = vmatpush.xpose.msk.msra.mxu0 %vm363_vm0, %v299_v12  ;;  %1011 = vrcp.f32 %v667_v42  ;;  %v309_v46 = vld [vmem:[%s1197_s13 + $0xb0] sm:$0xff]  ;;  %v308_v52 = vld [vmem:[%s1197_s13 + $0xa8] sm:$0xff]  ;;  %v307_v57 = vld [vmem:[%s1197_s13 + $0xa0] sm:$0xff] }
  0x26   : > { %898 = vmatpush.xpose.msk.msra.mxu1 %vm363_vm0, %v315_v13  ;;  %v325_v47 = vld [vmem:[%s1197_s13 + $0x130] sm:$0xff]  ;;  %v324_v54 = vld [vmem:[%s1197_s13 + $0x128] sm:$0xff]  ;;  %v323_v58 = vld [vmem:[%s1197_s13 + $0x120] sm:$0xff] }
  0x27   : > { %915 = vmatpush.xpose.msk.msra.mxu2 %vm363_vm0, %v331_v14  ;;  %v341_v48 = vld [vmem:[%s1197_s13 + $0x1b0] sm:$0xff]  ;;  %v1010_v49 = vpop.eup %1009  ;;  %v340_v55 = vld [vmem:[%s1197_s13 + $0x1a8] sm:$0xff]  ;;  %v339_v59 = vld [vmem:[%s1197_s13 + $0x1a0] sm:$0xff] }
  0x28   : > { %932 = vmatpush.xpose.msk.msra.mxu3 %vm363_vm0, %v347_v15  ;;  %v688_v53 = vmul.f32 0.6931472, %v1010_v49  ;;  %v290_v60 = vld [vmem:[%s1197_s13 + $0x18] sm:$0xff]  ;;  %v289_v0 = vld [vmem:[%s1197_s13 + $0x10] sm:$0xff]  ;;  %v288_v4 = vld [vmem:[%s1197_s13 + $0x8] sm:$0xff] }
  0x29   : > { %882 = vmatpush.xpose.msk.msra.mxu0 %vm363_vm0, %v298_v16  ;;  %v306_v61 = vld [vmem:[%s1197_s13 + $0x98] sm:$0xff]  ;;  %v305_v1 = vld [vmem:[%s1197_s13 + $0x90] sm:$0xff]  ;;  %v304_v5 = vld [vmem:[%s1197_s13 + $0x88] sm:$0xff] }
  0x2a   : > { %899 = vmatpush.xpose.msk.msra.mxu1 %vm363_vm0, %v314_v17  ;;  %691 = vperm.xlu1 %1006, %v688_v53   ;;  %v322_v62 = vld [vmem:[%s1197_s13 + $0x118] sm:$0xff]  ;;  %v321_v2 = vld [vmem:[%s1197_s13 + $0x110] sm:$0xff]  ;;  %v320_v6 = vld [vmem:[%s1197_s13 + $0x108] sm:$0xff] }
  0x2b   : > { %916 = vmatpush.xpose.msk.msra.mxu2 %vm363_vm0, %v330_v18  ;;  %v1012_v50 = vpop.eup %1011  ;;  %v338_v63 = vld [vmem:[%s1197_s13 + $0x198] sm:$0xff]  ;;  %v337_v3 = vld [vmem:[%s1197_s13 + $0x190] sm:$0xff]  ;;  %v336_v7 = vld [vmem:[%s1197_s13 + $0x188] sm:$0xff] }
  0x2c   : > { %933 = vmatpush.xpose.msk.msra.mxu3 %vm363_vm0, %v346_v19  ;;  %679 = vperm.xlu0 %1005, %v1012_v50   ;;  %v287_v8 = vld [vmem:[%s1197_s13] sm:$0xff]  ;;  %v357_v14 = vld [vmem:[%s283_s9 + $0x8] sm:$0xff] }
  0x2d   : > { %883 = vmatpush.xpose.msk.msra.mxu0 %vm363_vm0, %v297_v22  ;;  %v303_v9 = vld [vmem:[%s1197_s13 + $0x80] sm:$0xff]  ;;  %648 = vst [vmem:[#allocation1 + $0x10] ss:$2 sm:$0xff] %v357_v14 }
  0x2e   : > { %900 = vmatpush.xpose.msk.msra.mxu1 %vm363_vm0, %v313_v23  ;;  %v319_v10 = vld [vmem:[%s1197_s13 + $0x100] sm:$0xff] }
  0x2f   : > { %917 = vmatpush.xpose.msk.msra.mxu2 %vm363_vm0, %v329_v24  ;;  %v335_v11 = vld [vmem:[%s1197_s13 + $0x180] sm:$0xff] }
  0x30   : > { %934 = vmatpush.xpose.msk.msra.mxu3 %vm363_vm0, %v345_v25  ;;  %v351_v12 = vld [vmem:[%s1423_s1] sm:$0xf] }
  0x31   : > { %884 = vmatpush.xpose.msk.msra.mxu0 %vm363_vm0, %v296_v26  ;;  %v356_v13 = vld [vmem:[%s283_s9] sm:$0xff]  ;;  %s1033_s9 = scalar_lea.hbm %s1428_s6, 32 }
  0x32   : > { %901 = vmatpush.xpose.msk.msra.mxu1 %vm363_vm0, %v312_v27  ;;  %646 = vst [vmem:[#allocation1] ss:$2 sm:$0xff] %v356_v13  ;;  %p1035_p2 = scmp.lt.s32.totalorder %s1033_s9, %s1029_s26 }
  0x33   : > { %918 = vmatpush.xpose.msk.msra.mxu2 %vm363_vm0, %v328_v28 }
  0x34   : > { %935 = vmatpush.xpose.msk.msra.mxu3 %vm363_vm0, %v344_v29  ;;  %v651_v17 = vld.sshfl [vmem:[#allocation1 + $0x10] sm:$0xff pattern:$0x75316420]  ;;  %v652_v18 = vld.sshfl [vmem:[#allocation1 + $0x18] sm:$0xff pattern:$0x75316420]  ;;  %p1036_p3 = por %p1035_p2, %p1034_p1 }
  0x35   : > { %885 = vmatpush.xpose.msk.msra.mxu0 %vm363_vm0, %v295_v31 }
  0x36   : > { %902 = vmatpush.xpose.msk.msra.mxu1 %vm363_vm0, %v311_v32  ;;  %p1037_p4 = pnand %p1036_p3, %p1032_p0 }
  0x37   : > { %919 = vmatpush.xpose.msk.msra.mxu2 %vm363_vm0, %v327_v34 }
  0x38   : > { %936 = vmatpush.xpose.msk.msra.mxu3 %vm363_vm0, %v343_v35 }
  0x39   : > { %886 = vmatpush.xpose.msk.msra.mxu0 %vm363_vm0, %v294_v39  ;;  %v649_v15 = vld.sshfl [vmem:[#allocation1] sm:$0xff pattern:$0x75316420]  ;;  %v650_v16 = vld.sshfl [vmem:[#allocation1 + $0x8] sm:$0xff pattern:$0x75316420] }
  0x3a   : > { %903 = vmatpush.xpose.msk.msra.mxu1 %vm363_vm0, %v310_v40 }
  0x3b   : > { %920 = vmatpush.xpose.msk.msra.mxu2 %vm363_vm0, %v326_v43 }
  0x3c   : > { %937 = vmatpush.xpose.msk.msra.mxu3 %vm363_vm0, %v342_v44 }
  0x3d   : > { %887 = vmatpush.xpose.msk.msra.mxu0 %vm363_vm0, %v293_v45 }
  0x3e   : > { %904 = vmatpush.xpose.msk.msra.mxu1 %vm363_vm0, %v309_v46 }
  0x3f   : > { %921 = vmatpush.xpose.msk.msra.mxu2 %vm363_vm0, %v325_v47 }
  0x40   : > { %938 = vmatpush.xpose.msk.msra.mxu3 %vm363_vm0, %v341_v48 }
  0x41   : > { %888 = vmatpush.xpose.msk.msra.mxu0 %vm363_vm0, %v292_v51 }
  0x42   : > { %905 = vmatpush.xpose.msk.msra.mxu1 %vm363_vm0, %v308_v52 }
  0x43   : > { %922 = vmatpush.xpose.msk.msra.mxu2 %vm363_vm0, %v324_v54 }
  0x44   : > { %939 = vmatpush.xpose.msk.msra.mxu3 %vm363_vm0, %v340_v55 }
  0x45   : > { %889 = vmatpush.xpose.msk.msra.mxu0 %vm363_vm0, %v291_v56 }
  0x46   : > { %906 = vmatpush.xpose.msk.msra.mxu1 %vm363_vm0, %v307_v57 }
  0x47   : > { %923 = vmatpush.xpose.msk.msra.mxu2 %vm363_vm0, %v323_v58 }
  0x48   : > { %940 = vmatpush.xpose.msk.msra.mxu3 %vm363_vm0, %v339_v59 }
  0x49   : > { %890 = vmatpush.xpose.msk.msra.mxu0 %vm363_vm0, %v290_v60 }
  0x4a   : > { %907 = vmatpush.xpose.msk.msra.mxu1 %vm363_vm0, %v306_v61 }
  0x4b   : > { %924 = vmatpush.xpose.msk.msra.mxu2 %vm363_vm0, %v322_v62 }
  0x4c   : > { %941 = vmatpush.xpose.msk.msra.mxu3 %vm363_vm0, %v338_v63 }
  0x4d   : > { %891 = vmatpush.xpose.msk.msra.mxu0 %vm363_vm0, %v289_v0 }
  0x4e   : > { %908 = vmatpush.xpose.msk.msra.mxu1 %vm363_vm0, %v305_v1 }
  0x4f   : > { %925 = vmatpush.xpose.msk.msra.mxu2 %vm363_vm0, %v321_v2 }
  0x50   : > { %942 = vmatpush.xpose.msk.msra.mxu3 %vm363_vm0, %v337_v3 }
  0x51   : > { %892 = vmatpush.xpose.msk.msra.mxu0 %vm363_vm0, %v288_v4 }
  0x52   : > { %909 = vmatpush.xpose.msk.msra.mxu1 %vm363_vm0, %v304_v5 }
  0x53   : > { %926 = vmatpush.xpose.msk.msra.mxu2 %vm363_vm0, %v320_v6 }
  0x54   : > { %943 = vmatpush.xpose.msk.msra.mxu3 %vm363_vm0, %v336_v7 }
  0x55   : > { %893 = vmatpush.xpose.msk.msra.mxu0 %vm363_vm0, %v287_v8 }
  0x56   : > { %910 = vmatpush.xpose.msk.msra.mxu1 %vm363_vm0, %v303_v9 }
  0x57   : > { %927 = vmatpush.xpose.msk.msra.mxu2 %vm363_vm0, %v319_v10 }
  0x58   : > { %944 = vmatpush.xpose.msk.msra.mxu3 %vm363_vm0, %v335_v11  ;;  %894 = vmatmul.msk.f32.vlgmr.msra.gmra.mxu0 %vm363_vm0, %v351_v12 }
  0x59   : > { %911 = vmatmul.msk.f32.vlgmr.msra.gmra.mxu1 %vm363_vm0, %v351_v12 }
  0x5a   : > { %928 = vmatmul.msk.f32.vlgmr.msra.gmra.mxu2 %vm363_vm0, %v351_v12 }
  0x5b   : > { %945 = vmatmul.msk.f32.vlgmr.msra.gmra.mxu3 %vm363_vm0, %v351_v12 }
  0x89   : > { %v1348_v24 = vpop.permute.xlu1 %360 }
  0x91   : > { %v642_v19 = vpop.permute.xlu0 %641 }
  0x92   : > { %v657_v20 = vmul.f32 %v649_v15, %v642_v19  ;;  %v658_v21 = vmul.f32 %v650_v16, %v642_v19  ;;  %v1344_v22 = vmul.f32 %v651_v17, %v642_v19  ;;  %v1346_v23 = vmul.f32 %v652_v18, %v642_v19 }
  0x94   : > { %v669_v25 = vmul.f32 %v657_v20, %v657_v20  ;;  %v670_v26 = vmul.f32 %v658_v21, %v658_v21  ;;  %v671_v27 = vmul.f32 %v1344_v22, %v1344_v22  ;;  %v672_v28 = vmul.f32 %v1346_v23, %v1346_v23 }
  0x96   : > { %v673_v29 = vsub.f32 0.0, %v669_v25  ;;  %v674_v30 = vsub.f32 0.0, %v670_v26  ;;  %v675_v31 = vsub.f32 0.0, %v671_v27  ;;  %v676_v32 = vsub.f32 0.0, %v672_v28 }
  0x9c   : > { %v692_v38 = vpop.permute.xlu1 %691 }
  0x9e   : > { %v680_v33 = vpop.permute.xlu0 %679 }
  0x9f   : > { %v682_v34 = vmul.f32 %v680_v33, %v673_v29  ;;  %v683_v35 = vmul.f32 %v680_v33, %v674_v30  ;;  %v684_v36 = vmul.f32 %v680_v33, %v675_v31  ;;  %v685_v37 = vmul.f32 %v680_v33, %v676_v32 }
  0xa1   : > { %v694_v39 = vsub.f32 %v682_v34, %v692_v38  ;;  %v695_v40 = vsub.f32 %v683_v35, %v692_v38  ;;  %v696_v41 = vsub.f32 %v684_v36, %v692_v38  ;;  %v697_v42 = vsub.f32 %v685_v37, %v692_v38 }
  0xa3   : > { %v946_v43 = vadd.f32 -0.9189385, %v694_v39  ;;  %v947_v44 = vadd.f32 -0.9189385, %v695_v40  ;;  %v948_v45 = vadd.f32 -0.9189385, %v696_v41 }
  0xa4   : > { %v949_v46 = vadd.f32 -0.9189385, %v697_v42 }
  0xa5   : > { %v719_v47 = vrot.slane %v947_v44, 4 }
  0xa6   : > { %v720_v48 = vrot.slane %v949_v46, 4 }
  0xa7   : > { %v721_v49 = vsel %vm708_vm1, %v946_v43, %v719_v47 }
  0xa8   : > { %v722_v50 = vsel %vm708_vm1, %v948_v45, %v720_v48  ;;  %725 = vst [vmem:[%s272_s16] sm:$0xff] %v721_v49 }
  0xa9   : > { %726 = vst [vmem:[%s272_s16 + $0x8] sm:$0xff] %v722_v50 }
  0xaa   : > { %1040 = shalt.err (!%p1037_p4)
}
  0xab   : > { %961 = dma.vmem_to_hbm [thread:$0]  (%p1183_p5), %s762_s17, 256, %s764_s18, %s733_s19  }
  0xac   : > { %s744_s20 = scalar_lea.hbm %s1427_s5, %s958_s11  ;;  %s265_s17 = scalar_lea.vmem [#allocation2], %s872_s12 }
  0xad   : > { %s746_s18 = sshll.u32 %s265_s17, 4  ;;  %s748_s19 = sshll.u32 %s744_s20, 4  ;;  %s747_s18 = int_to_ptr.vmem [resolvable:$true] %s746_s18  ;;  %s749_s19 = int_to_ptr.hbm [resolvable:$true] %s748_s19 }
  0xae   : > { %s728_s25 = scalar_lea.sflag [#allocation3], %s1355_s10  ;;  %s1055_s11 = sshra.s32 %s749_s19, 4  ;;  %s1056_s11 = int_to_ptr.hbm [resolvable:$true] %s1055_s11 }
  0xaf   : > { %s1057_s26 = scalar_lea.hbm %s1056_s11, 16  ;;  %s1061_s29 = scalar_lea.hbm %s1427_s5, 32 }
  0xb0   : > { %p1058_p7 = scmp.ne.s32.totalorder %s1056_s11, %s1057_s26  ;;  %p1062_p10 = scmp.lt.s32.totalorder %s1056_s11, %s1427_s5 }
  0xb1   : > { %p1063_p11 = scmp.lt.s32.totalorder %s1061_s29, %s1057_s26 }
  0xb2   : > { %p1059_p8 = pnand %p1058_p7, %p1183_p5 }
  0xb3   : > { %p1064_p12 = por %p1063_p11, %p1062_p10 }
  0xb4   : > { %p1060_p9 = pneg %p1059_p8 }
  0xb6   : > { %p1065_p13 = pnand %p1064_p12, %p1060_p9 }
  0xd5   : > { %v576_v51 = vpop.f32.mrf.mxu0 }
  0xd6   : > { %v596_v52 = vpop.f32.mrf.mxu1  ;;  %v577_v53 = vadd.f32 %v576_v51, %v1348_v24 }
  0xd7   : > { %v597_v54 = vadd.f32 %v596_v52, %v1348_v24 }
  0xd8   : > { %v661_v56 = vadd.f32 %v657_v20, %v577_v53 }
  0xd9   : > { %v662_v55 = vadd.f32 %v658_v21, %v597_v54 }
  0xdb   : > { %v706_v57 = vrot.slane %v662_v55, 4 }
  0xdd   : > { %v616_v58 = vpop.f32.mrf.mxu2  ;;  %v709_v60 = vsel %vm708_vm1, %v661_v56, %v706_v57 }
  0xde   : > { %v636_v59 = vpop.f32.mrf.mxu3  ;;  %v617_v61 = vadd.f32 %v616_v58, %v1348_v24  ;;  %713 = vst [vmem:[%s265_s17] sm:$0xff] %v709_v60 }
  0xdf   : > { %v637_v62 = vadd.f32 %v636_v59, %v1348_v24 }
  0xe0   : > { %v663_v0 = vadd.f32 %v1344_v22, %v617_v61 }
  0xe1   : > { %v664_v63 = vadd.f32 %v1346_v23, %v637_v62 }
  0xe3   : > { %v707_v1 = vrot.slane %v664_v63, 4 }
  0xe5   : > { %v710_v2 = vsel %vm708_vm1, %v663_v0, %v707_v1 }
  0xe6   : > { %714 = vst [vmem:[%s265_s17 + $0x8] sm:$0xff] %v710_v2 }
  0xe7   : > { %1068 = shalt.err (!%p1065_p13)
}
  0xe8   : > { %960 = dma.vmem_to_hbm [thread:$0]  (%p1183_p5), %s747_s18, 256, %s749_s19, %s728_s25  }
  0xe9 PF: > { %p971_p0 = scmp.ge.s32.totalorder %s1107_s24, 2  ;;  %s775_s10 = sand.u32 1, %s1095_s21  }
  0xea   : > { %s776_s14 = scalar_lea.sflag [#allocation3], %s775_s10 }
  0xeb   : > { %p965_p1 = pnand %p971_p0, %p1187_p6 }
  0xed   : > { %p966_p2 = pneg %p965_p1 }
  0xef   : > { %1086 = dma.done.wait (%p966_p2), %s776_s14, 256  }
  0xf0   : > { %1088 = vsyncadd (%p966_p2), %s776_s14, 4294967040  ;;  %s786_s15 = scalar_lea.sflag [#allocation5], %s775_s10 }
  0xf1   : > { %1090 = dma.done.wait (%p966_p2), %s786_s15, 256  }
  0xf2   : > { %1092 = vsyncadd (%p966_p2), %s786_s15, 4294967040  ;;  %p20_p5 = scmp.ge.s32.totalorder %s1170_s27, 4   ;;  %s1431_s21 = smov %s1099_s22 }
  0xf3   : > { %s1432_s22 = smov %s1103_s23  ;;  %s1433_s23 = smov %s1181_s30 }
  0xf4   : > { %s1434_s24 = smov %s1170_s27  ;;  %22 = sbr.rel (!%p20_p5) target bundleno = 5 (0x5), region = 96 }
  0xf9   :  { %792 = vsyncpa [#allocation3], 1 }
  0xfa   :  { %794 = vsyncpa [#allocation3 + $0x1], 1 }
  0xfb   :  { %795 = vsyncpa [#allocation5], 1 }
  0xfc   :  { %797 = vsyncpa [#allocation5 + $0x1], 1 }

</bundles_post_ra>
